<compile_context>
chip_gen: v5e
topology: v5e:2x2
jax: 0.10.0
libtpu: 0.0.40
codegen_flags: <defaults>
</compile_context>

<pallas_src>
import math

import jax
import jax.numpy as jnp
from jax.experimental import pallas as pl
from jax.experimental.pallas import tpu as pltpu


# ---------------------------------------------------------------------------
# Fused Pallas kernel: all up-sampling layers in one grid step, transposed layout.
# Refs (in order): L+1 trend slabs (T_k, TM) coarse->fine, then 4L params, then L outputs.
# ---------------------------------------------------------------------------
def _make_fused_kernel(num_layers):
    n_trends = num_layers + 1

    def kernel(*refs):
        trend_refs = refs[:n_trends]
        param_refs = refs[n_trends:n_trends + 4 * num_layers]
        out_refs = refs[n_trends + 4 * num_layers:]

        inv_sqrt2 = jnp.float32(1.0 / math.sqrt(2.0))
        out_low = trend_refs[0][...].astype(jnp.float32)              # (T_coarse, TM)

        for i in range(num_layers):                                   # small L, unrolled
            w1 = param_refs[4 * i][...]                               # (T_out, T_in)
            b1 = param_refs[4 * i + 1][...]                           # (T_out, 1)
            w2 = param_refs[4 * i + 2][...]                           # (T_out, T_out)
            b2 = param_refs[4 * i + 3][...]                           # (T_out, 1)

            h = jnp.dot(w1, out_low, preferred_element_type=jnp.float32) + b1
            # Exact (erf-based) GELU, matching torch.nn.GELU() default.
            # TODO(synk): switch to tanh-approx GELU (EUP slot) if VALU ever binds and
            # tolerance allows.
            g = 0.5 * h * (1.0 + jax.lax.erf(h * inv_sqrt2))
            y = jnp.dot(w2, g, preferred_element_type=jnp.float32) + b2
            out = trend_refs[i + 1][...].astype(jnp.float32) + y      # residual w/ high

            out_refs[i][...] = out.astype(out_refs[i].dtype)
            out_low = out                                             # carried in VMEM

    return kernel


def _vmem_limit_bytes():
    """3/4 of physical VMEM, capped: ~96 MiB on v5e/v6e (128 MiB), ~48 MiB on v7x (64 MiB)."""
    try:
        phys = int(pltpu.get_tpu_info().vmem_capacity_bytes)
    except Exception:
        phys = 64 << 20                                               # conservative fallback
    return min(phys * 3 // 4, 112 << 20)


# ---------------------------------------------------------------------------
# Slab-layout entry point (preferred): zero relayout traffic.
#   slabs[k]: (T_k, M) with k = 0 the COARSEST scale and M = B*C on the lane axis.
#   params[i] = (W1 (T_out,T_in), b1 (T_out,1), W2 (T_out,T_out), b2 (T_out,1))
#               in PyTorch nn.Linear (out, in) layout.
# Returns L mixed slabs [(T_k, M) for k = 1..L] (coarse->fine, coarsest is a pass-through
# handled by the caller).
# ---------------------------------------------------------------------------
def multi_scale_trend_mixing_slabs(slabs, params, *, tile_m=2048, vmem_limit_bytes=None):
    L = len(params)
    assert len(slabs) == L + 1
    M = int(slabs[0].shape[1])
    dtype = slabs[0].dtype
    itemsize = jnp.dtype(dtype).itemsize
    t_rev = [int(s.shape[0]) for s in slabs]                          # coarse -> fine
    out_T = t_rev[1:]                                                 # layer i -> T_rev[i+1]

    if vmem_limit_bytes is None:
        vmem_limit_bytes = _vmem_limit_bytes()

    # ---- lane tile: biggest that fits the (double-buffered) VMEM budget ----------------
    param_bytes = 2 * sum(int(p.size) * p.dtype.itemsize for pp in params for p in pp)
    lane_bytes = itemsize * (sum(t_rev) + sum(out_T))                 # 1 lane col, all slabs
    budget = max(vmem_limit_bytes - param_bytes - (8 << 20), 2 << 20)  # compiler headroom
    tm_cap = budget // (2 * lane_bytes)                               # 2x for double buffer

    if M >= 128:
        TM = min(tile_m, tm_cap, M)
        TM = max(128, (TM // 128) * 128)                              # lane-aligned
        # Keep >= 2 grid steps when M allows, so both v7x TensorCores get work.
        if pl.cdiv(M, TM) < 2 and M > 128:
            TM = max(128, ((pl.cdiv(M, 2) + 127) // 128) * 128)
    else:
        TM = M                                                        # full (legal) lane dim
    grid = (pl.cdiv(M, TM),)                                          # ragged tail auto-masked

    # ---- specs --------------------------------------------------------------------------
    in_specs = [pl.BlockSpec((tk, TM), lambda j: (0, j)) for tk in t_rev]
    flat_params = []
    for (w1, b1, w2, b2) in params:
        for p in (w1, b1, w2, b2):
            flat_params.append(p)
            # Tiny, grid-invariant parameter tiles stay resident.
            # TODO(synk): pipeline_mode=pl.Buffered(1) to drop their (negligible) 2nd buffer.
            in_specs.append(pl.BlockSpec(p.shape, lambda j: (0, 0)))

    out_specs = [pl.BlockSpec((tk, TM), lambda j: (0, j)) for tk in out_T]
    out_shapes = [jax.ShapeDtypeStruct((tk, M), dtype) for tk in out_T]

    # ---- advisory cost estimate (honest itemsize) ----------------------------------------
    flops = 0
    transcendentals = 0
    for (w1, _, w2, _) in params:
        t_out, t_in = w1.shape
        flops += M * (2 * t_in * t_out + 2 * t_out * t_out + 4 * t_out)
        transcendentals += M * t_out
    bytes_accessed = (itemsize * M * (sum(t_rev) + sum(out_T))
                      + sum(int(p.size) * p.dtype.itemsize for pp in params for p in pp))

    return pl.pallas_call(
        _make_fused_kernel(L),
        grid=grid,
        in_specs=in_specs,
        out_specs=out_specs,
        out_shape=out_shapes,
        compiler_params=pltpu.CompilerParams(
            dimension_semantics=("parallel",),                        # 2 TCs on v7x
            vmem_limit_bytes=int(vmem_limit_bytes)),
        cost_estimate=pl.CostEstimate(
            flops=flops, transcendentals=transcendentals,
            bytes_accessed=bytes_accessed),
    )(*slabs, *flat_params)


# ---------------------------------------------------------------------------
# Module-compatible wrapper (PyTorch contract: (B, C, T_k) in, (B, T_k, C) out).
# Only the transposes that the contract itself forces remain; the (B,C,T)->(B*C,T)
# reshape is free (contiguous).  Callers that can hand over / accept (T_k, B*C) slabs
# should call multi_scale_trend_mixing_slabs directly and pay zero relayout traffic.
# ---------------------------------------------------------------------------
def multi_scale_trend_mixing(trend_list, params, **kw):
    B, C, _ = trend_list[0].shape
    M = B * C
    L = len(params)
    assert len(trend_list) == L + 1

    rev = list(reversed(trend_list))                                  # coarse -> fine
    slabs = [jnp.transpose(t.reshape(M, t.shape[2])) for t in rev]    # (T_k, M)

    mixed = multi_scale_trend_mixing_slabs(slabs, params, **kw)

    outs = [jnp.transpose(rev[0], (0, 2, 1))]                         # coarsest: pass-through
    for y in mixed:
        tk = int(y.shape[0])
        outs.append(jnp.transpose(y.reshape(tk, B, C), (1, 0, 2)))    # (B, T_k, C)
    outs.reverse()
    return outs


# ---------------------------------------------------------------------------
# Pure-JAX reference (same math, no Pallas) for validation
# ---------------------------------------------------------------------------
def ref_forward(trend_list, params):
    rev = list(reversed(trend_list))
    out_low, out_high = rev[0], rev[1]
    outs = [jnp.transpose(out_low, (0, 2, 1))]
    for i in range(len(rev) - 1):
        w1, b1, w2, b2 = params[i]
        h = jnp.einsum("bct,ot->bco", out_low, w1) + b1[:, 0]
        g = jax.nn.gelu(h, approximate=False)
        res = jnp.einsum("bco,po->bcp", g, w2) + b2[:, 0]
        out_high = out_high + res
        out_low = out_high
        if i + 2 <= len(rev) - 1:
            out_high = rev[i + 2]
        outs.append(jnp.transpose(out_low, (0, 2, 1)))
    outs.reverse()
    return outs


# ---------------------------------------------------------------------------
# Deterministic parameter / input construction and smoke test
# ---------------------------------------------------------------------------
def make_params(key, seq_len, dsw, layers):
    """Layer i maps T_in = seq_len//dsw**(layers-i) -> T_out = seq_len//dsw**(layers-1-i)
    (matches the PyTorch module's reversed(range(layers)) construction).
    Weights stay in PyTorch (out, in) layout; biases become (out, 1) columns."""
    params = []
    for i in range(layers):
        t_in = seq_len // dsw ** (layers - i)
        t_out = seq_len // dsw ** (layers - 1 - i)
        key, k1, k2, k3, k4 = jax.random.split(key, 5)
        lim1 = 1.0 / math.sqrt(t_in)
        lim2 = 1.0 / math.sqrt(t_out)
        w1 = jax.random.uniform(k1, (t_out, t_in), jnp.float32, -lim1, lim1)
        b1 = jax.random.uniform(k2, (t_out,), jnp.float32, -lim1, lim1)
        w2 = jax.random.uniform(k3, (t_out, t_out), jnp.float32, -lim2, lim2)
        b2 = jax.random.uniform(k4, (t_out,), jnp.float32, -lim2, lim2)
        params.append((w1, b1.reshape(t_out, 1), w2, b2.reshape(t_out, 1)))
    return params


if __name__ == "__main__":
    seq_len, dsw, layers = 16, 2, 2          # scales: T = 16, 8, 4
    B, C = 2, 4

    key = jax.random.PRNGKey(0)
    key, pkey = jax.random.split(key)
    params = make_params(pkey, seq_len, dsw, layers)

    trend_list = []
    for k in range(layers + 1):
        key, xk = jax.random.split(key)
        t_k = seq_len // dsw ** k
        trend_list.append(jax.random.normal(xk, (B, C, t_k), jnp.float32))

    outs = multi_scale_trend_mixing(trend_list, params)
    outs = [jax.block_until_ready(o) for o in outs]

    refs = ref_forward(trend_list, params)
    for o, r in zip(outs, refs):
        assert o.shape == r.shape, (o.shape, r.shape)
        assert jnp.allclose(o, r, atol=1e-5, rtol=1e-5), float(jnp.max(jnp.abs(o - r)))

    print("KERNEL_OK")
</pallas_src>

<mosaic_0001>
module attributes {stable_mosaic.version = 11 : i64} {
  func.func @kernel(%arg0: i32, %arg1: memref<4x8xf32, #tpu.memory_space<vmem>>, %arg2: memref<8x8xf32, #tpu.memory_space<vmem>>, %arg3: memref<16x8xf32, #tpu.memory_space<vmem>>, %arg4: memref<8x4xf32, #tpu.memory_space<vmem>>, %arg5: memref<8x1xf32, #tpu.memory_space<vmem>>, %arg6: memref<8x8xf32, #tpu.memory_space<vmem>>, %arg7: memref<8x1xf32, #tpu.memory_space<vmem>>, %arg8: memref<16x8xf32, #tpu.memory_space<vmem>>, %arg9: memref<16x1xf32, #tpu.memory_space<vmem>>, %arg10: memref<16x16xf32, #tpu.memory_space<vmem>>, %arg11: memref<16x1xf32, #tpu.memory_space<vmem>>, %arg12: memref<8x8xf32, #tpu.memory_space<vmem>>, %arg13: memref<16x8xf32, #tpu.memory_space<vmem>>) attributes {dimension_semantics = [#tpu.dimension_semantics<parallel>], iteration_bounds = array<i64: 1>, scalar_prefetch = 0 : i64, scratch_operands = 0 : i64, tpu.core_type = #tpu.core_type<tc>, window_params = [{transform_indices = @transform_0, window_bounds = array<i64: 4, 8>}, {transform_indices = @transform_1, window_bounds = array<i64: 8, 8>}, {transform_indices = @transform_2, window_bounds = array<i64: 16, 8>}, {pipeline_mode = #tpu.pipeline_mode<synchronous>, transform_indices = @transform_3, window_bounds = array<i64: 8, 4>}, {pipeline_mode = #tpu.pipeline_mode<synchronous>, transform_indices = @transform_4, window_bounds = array<i64: 8, 1>}, {pipeline_mode = #tpu.pipeline_mode<synchronous>, transform_indices = @transform_5, window_bounds = array<i64: 8, 8>}, {pipeline_mode = #tpu.pipeline_mode<synchronous>, transform_indices = @transform_6, window_bounds = array<i64: 8, 1>}, {pipeline_mode = #tpu.pipeline_mode<synchronous>, transform_indices = @transform_7, window_bounds = array<i64: 16, 8>}, {pipeline_mode = #tpu.pipeline_mode<synchronous>, transform_indices = @transform_8, window_bounds = array<i64: 16, 1>}, {pipeline_mode = #tpu.pipeline_mode<synchronous>, transform_indices = @transform_9, window_bounds = array<i64: 16, 16>}, {pipeline_mode = #tpu.pipeline_mode<synchronous>, transform_indices = @transform_10, window_bounds = array<i64: 16, 1>}, {transform_indices = @transform_11, window_bounds = array<i64: 8, 8>}, {transform_indices = @transform_12, window_bounds = array<i64: 16, 8>}]} {
    %c0 = arith.constant 0 : index
    %c0_0 = arith.constant 0 : index
    %0 = vector.load %arg1[%c0, %c0_0] : memref<4x8xf32, #tpu.memory_space<vmem>>, vector<4x8xf32>
    %c0_1 = arith.constant 0 : index
    %c0_2 = arith.constant 0 : index
    %1 = vector.load %arg4[%c0_1, %c0_2] : memref<8x4xf32, #tpu.memory_space<vmem>>, vector<8x4xf32>
    %c0_3 = arith.constant 0 : index
    %c0_4 = arith.constant 0 : index
    %2 = vector.load %arg5[%c0_3, %c0_4] : memref<8x1xf32, #tpu.memory_space<vmem>>, vector<8x1xf32>
    %c0_5 = arith.constant 0 : index
    %c0_6 = arith.constant 0 : index
    %3 = vector.load %arg6[%c0_5, %c0_6] : memref<8x8xf32, #tpu.memory_space<vmem>>, vector<8x8xf32>
    %c0_7 = arith.constant 0 : index
    %c0_8 = arith.constant 0 : index
    %4 = vector.load %arg7[%c0_7, %c0_8] : memref<8x1xf32, #tpu.memory_space<vmem>>, vector<8x1xf32>
    %cst = arith.constant dense<0.000000e+00> : vector<8x8xf32>
    %5 = tpu.matmul %1, %0, %cst {dimension_numbers = #tpu.dot_dimension_numbers<[1], [0], [0], [1], [0, 0, 1, 1], [], []>} : vector<8x4xf32>, vector<4x8xf32>, vector<8x8xf32> -> vector<8x8xf32>
    %6 = vector.broadcast %2 : vector<8x1xf32> to vector<8x8xf32>
    %7 = arith.addf %5, %6 : vector<8x8xf32>
    %cst_9 = arith.constant 5.000000e-01 : f32
    %8 = vector.broadcast %cst_9 : f32 to vector<8x8xf32>
    %9 = arith.mulf %8, %7 : vector<8x8xf32>
    %cst_10 = arith.constant 0.707106769 : f32
    %10 = vector.broadcast %cst_10 : f32 to vector<8x8xf32>
    %11 = arith.mulf %7, %10 : vector<8x8xf32>
    %12 = math.erf %11 : vector<8x8xf32>
    %cst_11 = arith.constant 1.000000e+00 : f32
    %13 = vector.broadcast %cst_11 : f32 to vector<8x8xf32>
    %14 = arith.addf %13, %12 : vector<8x8xf32>
    %15 = arith.mulf %9, %14 : vector<8x8xf32>
    %cst_12 = arith.constant dense<0.000000e+00> : vector<8x8xf32>
    %16 = tpu.matmul %3, %15, %cst_12 {dimension_numbers = #tpu.dot_dimension_numbers<[1], [0], [0], [1], [0, 0, 1, 1], [], []>} : vector<8x8xf32>, vector<8x8xf32>, vector<8x8xf32> -> vector<8x8xf32>
    %17 = vector.broadcast %4 : vector<8x1xf32> to vector<8x8xf32>
    %18 = arith.addf %16, %17 : vector<8x8xf32>
    %c0_13 = arith.constant 0 : index
    %c0_14 = arith.constant 0 : index
    %19 = vector.load %arg2[%c0_13, %c0_14] : memref<8x8xf32, #tpu.memory_space<vmem>>, vector<8x8xf32>
    %20 = arith.addf %19, %18 : vector<8x8xf32>
    %c0_15 = arith.constant 0 : index
    %c0_16 = arith.constant 0 : index
    %21 = vector.load %arg12[%c0_15, %c0_16] : memref<8x8xf32, #tpu.memory_space<vmem>>, vector<8x8xf32>
    tpu.vector_store %arg12[%c0_15, %c0_16], %20 {strides = array<i32>} : memref<8x8xf32, #tpu.memory_space<vmem>>, vector<8x8xf32>,
    %c0_17 = arith.constant 0 : index
    %c0_18 = arith.constant 0 : index
    %22 = vector.load %arg8[%c0_17, %c0_18] : memref<16x8xf32, #tpu.memory_space<vmem>>, vector<16x8xf32>
    %c0_19 = arith.constant 0 : index
    %c0_20 = arith.constant 0 : index
    %23 = vector.load %arg9[%c0_19, %c0_20] : memref<16x1xf32, #tpu.memory_space<vmem>>, vector<16x1xf32>
    %c0_21 = arith.constant 0 : index
    %c0_22 = arith.constant 0 : index
    %24 = vector.load %arg10[%c0_21, %c0_22] : memref<16x16xf32, #tpu.memory_space<vmem>>, vector<16x16xf32>
    %c0_23 = arith.constant 0 : index
    %c0_24 = arith.constant 0 : index
    %25 = vector.load %arg11[%c0_23, %c0_24] : memref<16x1xf32, #tpu.memory_space<vmem>>, vector<16x1xf32>
    %cst_25 = arith.constant dense<0.000000e+00> : vector<16x8xf32>
    %26 = tpu.matmul %22, %20, %cst_25 {dimension_numbers = #tpu.dot_dimension_numbers<[1], [0], [0], [1], [0, 0, 1, 1], [], []>} : vector<16x8xf32>, vector<8x8xf32>, vector<16x8xf32> -> vector<16x8xf32>
    %27 = vector.broadcast %23 : vector<16x1xf32> to vector<16x8xf32>
    %28 = arith.addf %26, %27 : vector<16x8xf32>
    %cst_26 = arith.constant 5.000000e-01 : f32
    %29 = vector.broadcast %cst_26 : f32 to vector<16x8xf32>
    %30 = arith.mulf %29, %28 : vector<16x8xf32>
    %cst_27 = arith.constant 0.707106769 : f32
    %31 = vector.broadcast %cst_27 : f32 to vector<16x8xf32>
    %32 = arith.mulf %28, %31 : vector<16x8xf32>
    %33 = math.erf %32 : vector<16x8xf32>
    %cst_28 = arith.constant 1.000000e+00 : f32
    %34 = vector.broadcast %cst_28 : f32 to vector<16x8xf32>
    %35 = arith.addf %34, %33 : vector<16x8xf32>
    %36 = arith.mulf %30, %35 : vector<16x8xf32>
    %cst_29 = arith.constant dense<0.000000e+00> : vector<16x8xf32>
    %37 = tpu.matmul %24, %36, %cst_29 {dimension_numbers = #tpu.dot_dimension_numbers<[1], [0], [0], [1], [0, 0, 1, 1], [], []>} : vector<16x16xf32>, vector<16x8xf32>, vector<16x8xf32> -> vector<16x8xf32>
    %38 = vector.broadcast %25 : vector<16x1xf32> to vector<16x8xf32>
    %39 = arith.addf %37, %38 : vector<16x8xf32>
    %c0_30 = arith.constant 0 : index
    %c0_31 = arith.constant 0 : index
    %40 = vector.load %arg3[%c0_30, %c0_31] : memref<16x8xf32, #tpu.memory_space<vmem>>, vector<16x8xf32>
    %41 = arith.addf %40, %39 : vector<16x8xf32>
    %c0_32 = arith.constant 0 : index
    %c0_33 = arith.constant 0 : index
    %42 = vector.load %arg13[%c0_32, %c0_33] : memref<16x8xf32, #tpu.memory_space<vmem>>, vector<16x8xf32>
    tpu.vector_store %arg13[%c0_32, %c0_33], %41 {strides = array<i32>} : memref<16x8xf32, #tpu.memory_space<vmem>>, vector<16x8xf32>,
    return
  }
  func.func @transform_0(%arg0: i32) -> (i32, i32) {
    %c0_i32 = arith.constant 0 : i32
    %c0_i32_0 = arith.constant 0 : i32
    return %c0_i32, %arg0 : i32, i32
  }
  func.func @transform_1(%arg0: i32) -> (i32, i32) {
    %c0_i32 = arith.constant 0 : i32
    %c0_i32_0 = arith.constant 0 : i32
    return %c0_i32, %arg0 : i32, i32
  }
  func.func @transform_2(%arg0: i32) -> (i32, i32) {
    %c0_i32 = arith.constant 0 : i32
    %c0_i32_0 = arith.constant 0 : i32
    return %c0_i32, %arg0 : i32, i32
  }
  func.func @transform_3(%arg0: i32) -> (i32, i32) {
    %c0_i32 = arith.constant 0 : i32
    %c0_i32_0 = arith.constant 0 : i32
    %c0_i32_1 = arith.constant 0 : i32
    return %c0_i32, %c0_i32_0 : i32, i32
  }
  func.func @transform_4(%arg0: i32) -> (i32, i32) {
    %c0_i32 = arith.constant 0 : i32
    %c0_i32_0 = arith.constant 0 : i32
    %c0_i32_1 = arith.constant 0 : i32
    return %c0_i32, %c0_i32_0 : i32, i32
  }
  func.func @transform_5(%arg0: i32) -> (i32, i32) {
    %c0_i32 = arith.constant 0 : i32
    %c0_i32_0 = arith.constant 0 : i32
    %c0_i32_1 = arith.constant 0 : i32
    return %c0_i32, %c0_i32_0 : i32, i32
  }
  func.func @transform_6(%arg0: i32) -> (i32, i32) {
    %c0_i32 = arith.constant 0 : i32
    %c0_i32_0 = arith.constant 0 : i32
    %c0_i32_1 = arith.constant 0 : i32
    return %c0_i32, %c0_i32_0 : i32, i32
  }
  func.func @transform_7(%arg0: i32) -> (i32, i32) {
    %c0_i32 = arith.constant 0 : i32
    %c0_i32_0 = arith.constant 0 : i32
    %c0_i32_1 = arith.constant 0 : i32
    return %c0_i32, %c0_i32_0 : i32, i32
  }
  func.func @transform_8(%arg0: i32) -> (i32, i32) {
    %c0_i32 = arith.constant 0 : i32
    %c0_i32_0 = arith.constant 0 : i32
    %c0_i32_1 = arith.constant 0 : i32
    return %c0_i32, %c0_i32_0 : i32, i32
  }
  func.func @transform_9(%arg0: i32) -> (i32, i32) {
    %c0_i32 = arith.constant 0 : i32
    %c0_i32_0 = arith.constant 0 : i32
    %c0_i32_1 = arith.constant 0 : i32
    return %c0_i32, %c0_i32_0 : i32, i32
  }
  func.func @transform_10(%arg0: i32) -> (i32, i32) {
    %c0_i32 = arith.constant 0 : i32
    %c0_i32_0 = arith.constant 0 : i32
    %c0_i32_1 = arith.constant 0 : i32
    return %c0_i32, %c0_i32_0 : i32, i32
  }
  func.func @transform_11(%arg0: i32) -> (i32, i32) {
    %c0_i32 = arith.constant 0 : i32
    %c0_i32_0 = arith.constant 0 : i32
    return %c0_i32, %arg0 : i32, i32
  }
  func.func @transform_12(%arg0: i32) -> (i32, i32) {
    %c0_i32 = arith.constant 0 : i32
    %c0_i32_0 = arith.constant 0 : i32
    return %c0_i32, %arg0 : i32, i32
  }
}

</mosaic_0001>

<bundles_post_ra>
// kernel: tpu_custom_call.1
= control target key start
LH: loop header
LB: loop body
LE: loop exit
PB: predicated region body
PF: predicated region fallthrough
CT: control target
= control target key end

     0   :  { %vm55_vm0 = vcmask 1043456   ;;  %vm51_vm1 = vcmask 31744   ;;  %v405_v2 = vmov 0   ;;  %s553_s0 = inlined_call_operand.vmem [shape: f32[4,8], index: 0, kind: input, shape index: {}]   ;;  %s554_s1 = inlined_call_operand.vmem [shape: f32[8,8], index: 1, kind: input, shape index: {}]   ;;  %s555_s2 = inlined_call_operand.vmem [shape: f32[16,8], index: 2, kind: input, shape index: {}]   ;;  %s556_s3 = inlined_call_operand.vmem [shape: f32[8,4], index: 3, kind: input, shape index: {}]   ;;  %s557_s4 = inlined_call_operand.vmem [shape: f32[8,1], index: 4, kind: input, shape index: {}]   ;;  %s558_s5 = inlined_call_operand.vmem [shape: f32[8,8], index: 5, kind: input, shape index: {}]   ;;  %s559_s6 = inlined_call_operand.vmem [shape: f32[8,1], index: 6, kind: input, shape index: {}]   ;;  %s560_s7 = inlined_call_operand.vmem [shape: f32[16,8], index: 7, kind: input, shape index: {}]   ;;  %s561_s8 = inlined_call_operand.vmem [shape: f32[16,1], index: 8, kind: input, shape index: {}]   ;;  %s562_s9 = inlined_call_operand.vmem [shape: f32[16,16], index: 9, kind: input, shape index: {}]   ;;  %s563_s10 = inlined_call_operand.vmem [shape: f32[16,1], index: 10, kind: input, shape index: {}]   ;;  %s564_s11 = inlined_call_operand.hbm [shape: f32[8,8], index: 11, kind: output, shape index: {0}]   ;;  %s565_s12 = inlined_call_operand.vmem [shape: f32[16,8], index: 12, kind: output, shape index: {1}]  }
   0x1   :  { %v41_v0 = vld [vmem:[%s553_s0] sm:$0xf]  ;;  %370 = vset.pattern.permute.xlu0 %v405_v2 }
   0x2   :  { %v42_v1 = vld [vmem:[%s556_s3] sm:$0xff]  ;;  %356 = vmatpush.msk.msra.mxu0 %vm55_vm0, %v41_v0 }
   0x3   :  { %v43_v3 = vld [vmem:[%s557_s4] sm:$0xff] }
   0x4   :  { %18 = vsyncpa [#allocation3], 0  ;;  %357 = vmatmul.msk.f32.vlgmr.msra.gmra.mxu0 %vm51_vm1, %v42_v1  ;;  %48 = vperm.xlu0 %370, %v43_v3   ;;  %v45_v4 = vld [vmem:[%s559_s6] sm:$0xff]  ;;  %vm128_vm6 = vcmask 64512   ;;  %v158_v48 = vld [vmem:[%s561_s8 + $0x8] sm:$0xff]  ;;  %vm300_vm15 = vcmask 130048  }
   0x5   :  { %371 = vset.pattern.permute.xlu1 %v405_v2  ;;  %372 = vset.pattern.permute.xlu2 %v405_v2  ;;  %v44_v47 = vld [vmem:[%s558_s5] sm:$0xff]  ;;  %v156_v56 = vld [vmem:[%s560_s7 + $0x8] sm:$0xff]  ;;  %s406_s22 = smov [#allocation2]   ;;  %s343_s26 = sshll.u32 %s564_s11, 4  ;;  %s344_s26 = int_to_ptr.hbm [resolvable:$true] %s343_s26 }
   0x6   :  { %170 = vperm.xlu1 %371, %v158_v48   ;;  %v157_v49 = vld [vmem:[%s561_s8] sm:$0xff]  ;;  %s341_s23 = sshll.u32 %s406_s22, 4  ;;  %s342_s23 = int_to_ptr.vmem [resolvable:$true] %s341_s23 }
   0x7   :  { %v152_v52 = vld [vmem:[%s554_s1] sm:$0xff] }
   0x8   :  { %v155_v55 = vld [vmem:[%s560_s7] sm:$0xff] }
   0xc   :  { %125 = vperm.xlu0 %370, %v45_v4  }
   0xe   :  { %165 = vperm.xlu1 %371, %v157_v49  }
  0x76   :  { %v49_v5 = vpop.permute.xlu0 %48 }
  0x78   :  { %v171_v57 = vpop.permute.xlu1 %170 }
  0x7e   :  { %v126_v50 = vpop.permute.xlu0 %125 }
  0x80   :  { %v166_v58 = vpop.permute.xlu1 %165 }
  0x81   :  { %v76_v6 = vpop.f32.mrf.mxu0 }
  0x82   :  { %v77_v7 = vadd.f32 %v76_v6, %v49_v5 }
  0x84   :  { %v80_v8 = vmul.f32 0.70710677, %v77_v7  ;;  %v79_v44 = vmul.f32 0.5, %v77_v7 }
  0x86   :  { %v81_v9 = vmul.f32 %v80_v8, %v80_v8 }
  0x88   :  { %v82_v10 = vmin.f32 %v81_v9, 16.0 }
  0x8a   :  { %v83_v11 = vmul.f32 2.1237322e-06, %v82_v10  ;;  %v94_v12 = vmul.f32 3.8918573e-05, %v82_v10 }
  0x8c   :  { %v84_v13 = vadd.f32 0.00028619796, %v83_v11  ;;  %v95_v14 = vadd.f32 0.001143296, %v94_v12 }
  0x8e   :  { %v85_v15 = vmul.f32 %v84_v13, %v82_v10  ;;  %v96_v16 = vmul.f32 %v95_v14, %v82_v10 }
  0x90   :  { %v97_v17 = vadd.f32 0.014752088, %v96_v16  ;;  %v86_v18 = vadd.f32 0.0036580483, %v85_v15 }
  0x92   :  { %v98_v19 = vmul.f32 %v97_v17, %v82_v10  ;;  %v87_v21 = vmul.f32 %v86_v18, %v82_v10 }
  0x94   :  { %v99_v20 = vadd.f32 0.112945676, %v98_v19  ;;  %v88_v24 = vadd.f32 0.05243302, %v87_v21 }
  0x96   :  { %v100_v22 = vmul.f32 %v99_v20, %v82_v10  ;;  %v89_v27 = vmul.f32 %v88_v24, %v82_v10 }
  0x98   :  { %v101_v23 = vadd.f32 0.4994258, %v100_v22  ;;  %v90_v28 = vadd.f32 0.18741608, %v89_v27 }
  0x9a   :  { %v102_v25 = vmul.f32 %v101_v23, %v82_v10  ;;  %v91_v30 = vmul.f32 %v90_v28, %v82_v10 }
  0x9c   :  { %v103_v26 = vadd.f32 1.0, %v102_v25  ;;  %v92_v34 = vadd.f32 1.1283791, %v91_v30 }
  0x9e   :  { %373 = vrcp.f32 %v103_v26  ;;  %v115_v33 = vand.u32 2147483648, %v103_v26  ;;  %v113_v36 = vand.u32 2147483647, %v103_v26  ;;  %vm109_vm3 = vweird.f32 %v103_v26 }
  0x9f   :  { %v93_v39 = vmul.f32 %v92_v34, %v80_v8 }
  0xa0   :  { %v116_v38 = vor.u32 1.1754944e-38, %v115_v33  ;;  %vm114_vm5 = vcmp.eq.f32.partialorder %v113_v36, 8.507059e+37 }
  0xa4   :  { %v374_v29 = vpop.eup %373 }
  0xa5   :  { %v105_v31 = vmul.f32 %v374_v29, %v103_v26  ;;  %vm110_vm2 = vweird.f32 %v374_v29 }
  0xa6   :  { %vm111_vm4 = vmor %vm109_vm3, %vm110_vm2 }
  0xa7   :  { %v106_v32 = vsub.f32 1.0, %v105_v31 }
  0xa9   :  { %v107_v35 = vmul.f32 %v374_v29, %v106_v32 }
  0xab   :  { %v108_v37 = vadd.f32 %v374_v29, %v107_v35 }
  0xad   :  { %v112_v40 = vsel %vm111_vm4, %v374_v29, %v108_v37  ;;  %v161_v37 = vld [vmem:[%s563_s10] sm:$0xff] }
  0xae   :  { %v117_v41 = vsel %vm114_vm5, %v116_v38, %v112_v40  ;;  %292 = vperm.xlu2 %372, %v161_v37  }
  0xaf   :  { %v118_v42 = vmul.f32 %v117_v41, %v93_v39 }
  0xb1   :  { %v358_v43 = vclamps-f32 %v118_v42, 1.0 }
  0xb3   :  { %v121_v45 = vadd.f32 1.0, %v358_v43 }
  0xb5   :  { %v122_v46 = vmul.f32 %v121_v45, %v79_v44  ;;  %v162_v44 = vld [vmem:[%s563_s10 + $0x8] sm:$0xff] }
  0xb6   :  { %297 = vperm.xlu2 %372, %v162_v44  }
  0xb7   :  { %147 = vmatpush.msra.mxu1 %v122_v46 }
  0xb8   :  { %359 = vmatmul.msk.f32.vlgmr.msra.gmra.mxu1 %vm128_vm6, %v44_v47 }
 0x135   :  { %v149_v51 = vpop.f32.mrf.mxu1 }
 0x136   :  { %v150_v53 = vadd.f32 %v149_v51, %v126_v50 }
 0x138   :  { %v153_v54 = vadd.f32 %v152_v52, %v150_v53 }
 0x13a   :  { %194 = vmatpush.msra.mxu2 %v153_v54  ;;  %154 = vst.msk [vmem:[#allocation2] sm:$0xff] %vm128_vm6, %v153_v54 }
 0x13b   :  { %360 = vmatmul.msk.f32.vlgmr.msra.gmra.mxu2 %vm128_vm6, %v155_v55  ;;  %346 = dma.vmem_to_hbm [thread:$0]  %s342_s23, 128, %s344_s26, [#allocation3]  }
 0x143   :  { %361 = vmatmul.msk.f32.gmra.mxu2 %vm128_vm6, %v156_v56 }
 0x1be   :  { %v196_v59 = vpop.f32.mrf.mxu2 }
 0x1bf   :  { %v506_v60 = vadd.f32 %v196_v59, %v166_v58 }
 0x1c1   :  { %v509_v61 = vmul.f32 0.70710677, %v506_v60 }
 0x1c3   :  { %v206_v62 = vmul.f32 %v509_v61, %v509_v61 }
 0x1c5   :  { %v207_v63 = vmin.f32 %v206_v62, 16.0 }
 0x1c6   :  { %v199_v0 = vpop.f32.mrf.mxu2 }
 0x1c7   :  { %v208_v1 = vmul.f32 2.1237322e-06, %v207_v63  ;;  %v513_v2 = vadd.f32 %v199_v0, %v171_v57  ;;  %v219_v3 = vmul.f32 3.8918573e-05, %v207_v63 }
 0x1c9   :  { %v209_v4 = vadd.f32 0.00028619796, %v208_v1  ;;  %v516_v5 = vmul.f32 0.70710677, %v513_v2  ;;  %v220_v6 = vadd.f32 0.001143296, %v219_v3 }
 0x1cb   :  { %v246_v7 = vmul.f32 %v516_v5, %v516_v5  ;;  %v221_v8 = vmul.f32 %v220_v6, %v207_v63  ;;  %v210_v9 = vmul.f32 %v209_v4, %v207_v63 }
 0x1cd   :  { %v247_v10 = vmin.f32 %v246_v7, 16.0  ;;  %v222_v11 = vadd.f32 0.014752088, %v221_v8  ;;  %v211_v15 = vadd.f32 0.0036580483, %v210_v9 }
 0x1cf   :  { %v248_v12 = vmul.f32 2.1237322e-06, %v247_v10  ;;  %v259_v13 = vmul.f32 3.8918573e-05, %v247_v10  ;;  %v223_v14 = vmul.f32 %v222_v11, %v207_v63  ;;  %v212_v22 = vmul.f32 %v211_v15, %v207_v63 }
 0x1d0   :  { %v202_v15 = vmul.f32 0.5, %v506_v60  ;;  %v293_v60 = vpop.permute.xlu2 %292 }
 0x1d1   :  { %v249_v16 = vadd.f32 0.00028619796, %v248_v12  ;;  %v260_v17 = vadd.f32 0.001143296, %v259_v13  ;;  %v224_v18 = vadd.f32 0.112945676, %v223_v14 }
 0x1d2   :  { %v213_v28 = vadd.f32 0.05243302, %v212_v22 }
 0x1d3   :  { %v250_v19 = vmul.f32 %v249_v16, %v247_v10  ;;  %v261_v20 = vmul.f32 %v260_v17, %v247_v10  ;;  %v225_v21 = vmul.f32 %v224_v18, %v207_v63  ;;  %v160_v18 = vld [vmem:[%s562_s9 + $0x8] sm:$0xff] }
 0x1d4   :  { %v214_v33 = vmul.f32 %v213_v28, %v207_v63 }
 0x1d5   :  { %v262_v23 = vadd.f32 0.014752088, %v261_v20  ;;  %v251_v24 = vadd.f32 0.0036580483, %v250_v19  ;;  %v226_v25 = vadd.f32 0.4994258, %v225_v21 }
 0x1d6   :  { %v215_v38 = vadd.f32 0.18741608, %v214_v33  ;;  %v330_v19 = vld [vmem:[%s555_s2] sm:$0xff] }
 0x1d7   :  { %v263_v26 = vmul.f32 %v262_v23, %v247_v10  ;;  %v227_v27 = vmul.f32 %v226_v25, %v207_v63  ;;  %v252_v30 = vmul.f32 %v251_v24, %v247_v10  ;;  %v331_v24 = vld [vmem:[%s555_s2 + $0x8] sm:$0xff] }
 0x1d8   :  { %v216_v43 = vmul.f32 %v215_v38, %v207_v63  ;;  %v298_v22 = vpop.permute.xlu2 %297 }
 0x1d9   :  { %v264_v29 = vadd.f32 0.112945676, %v263_v26  ;;  %v228_v31 = vadd.f32 1.0, %v227_v27  ;;  %v253_v35 = vadd.f32 0.05243302, %v252_v30 }
 0x1da   :  { %v217_v51 = vadd.f32 1.1283791, %v216_v43 }
 0x1db   :  { %v265_v32 = vmul.f32 %v264_v29, %v247_v10  ;;  %375 = vrcp.f32 %v228_v31  ;;  %v254_v41 = vmul.f32 %v253_v35, %v247_v10  ;;  %v240_v47 = vand.u32 2147483648, %v228_v31 }
 0x1dc   :  { %v238_v49 = vand.u32 2147483647, %v228_v31  ;;  %vm234_vm8 = vweird.f32 %v228_v31  ;;  %v218_v58 = vmul.f32 %v217_v51, %v509_v61  ;;  %v203_v61 = vmul.f32 0.5, %v513_v2 }
 0x1dd   :  { %v266_v34 = vadd.f32 0.4994258, %v265_v32  ;;  %v255_v45 = vadd.f32 0.18741608, %v254_v41  ;;  %v241_v55 = vor.u32 1.1754944e-38, %v240_v47 }
 0x1de   :  { %vm239_vm10 = vcmp.eq.f32.partialorder %v238_v49, 8.507059e+37 }
 0x1df   :  { %v267_v36 = vmul.f32 %v266_v34, %v247_v10  ;;  %v256_v52 = vmul.f32 %v255_v45, %v247_v10 }
 0x1e1   :  { %v268_v39 = vadd.f32 1.0, %v267_v36  ;;  %v376_v40 = vpop.eup %375  ;;  %v257_v63 = vadd.f32 1.1283791, %v256_v52 }
 0x1e2   :  { %v230_v42 = vmul.f32 %v376_v40, %v228_v31  ;;  %vm235_vm7 = vweird.f32 %v376_v40 }
 0x1e3   :  { %377 = vrcp.f32 %v268_v39  ;;  %vm236_vm9 = vmor %vm234_vm8, %vm235_vm7  ;;  %v280_v59 = vand.u32 2147483648, %v268_v39  ;;  %v278_v1 = vand.u32 2147483647, %v268_v39  ;;  %vm274_vm12 = vweird.f32 %v268_v39 }
 0x1e4   :  { %v231_v46 = vsub.f32 1.0, %v230_v42  ;;  %v258_v7 = vmul.f32 %v257_v63, %v516_v5  ;;  %v159_v5 = vld [vmem:[%s562_s9] sm:$0xff] }
 0x1e5   :  { %v281_v6 = vor.u32 1.1754944e-38, %v280_v59  ;;  %vm279_vm14 = vcmp.eq.f32.partialorder %v278_v1, 8.507059e+37 }
 0x1e6   :  { %v232_v48 = vmul.f32 %v376_v40, %v231_v46 }
 0x1e8   :  { %v233_v54 = vadd.f32 %v376_v40, %v232_v48 }
 0x1e9   :  { %v378_v50 = vpop.eup %377 }
 0x1ea   :  { %v270_v53 = vmul.f32 %v378_v50, %v268_v39  ;;  %v237_v57 = vsel %vm236_vm9, %v376_v40, %v233_v54  ;;  %vm275_vm11 = vweird.f32 %v378_v50 }
 0x1eb   :  { %v242_v62 = vsel %vm239_vm10, %v241_v55, %v237_v57  ;;  %vm276_vm13 = vmor %vm274_vm12, %vm275_vm11 }
 0x1ec   :  { %v271_v56 = vsub.f32 1.0, %v270_v53  ;;  %v243_v4 = vmul.f32 %v242_v62, %v218_v58 }
 0x1ee   :  { %v272_v0 = vmul.f32 %v378_v50, %v271_v56  ;;  %v362_v11 = vclamps-f32 %v243_v4, 1.0 }
 0x1f0   :  { %v273_v3 = vadd.f32 %v378_v50, %v272_v0  ;;  %v286_v14 = vadd.f32 1.0, %v362_v11 }
 0x1f2   :  { %v277_v8 = vsel %vm276_vm13, %v378_v50, %v273_v3  ;;  %v288_v17 = vmul.f32 %v286_v14, %v202_v15 }
 0x1f3   :  { %v282_v9 = vsel %vm279_vm14, %v281_v6, %v277_v8 }
 0x1f4   :  { %v283_v10 = vmul.f32 %v282_v9, %v258_v7 }
 0x1f6   :  { %v363_v12 = vclamps-f32 %v283_v10, 1.0 }
 0x1f8   :  { %v287_v13 = vadd.f32 1.0, %v363_v12 }
 0x1fa   :  { %v289_v16 = vmul.f32 %v287_v13, %v203_v61 }
 0x1fc   :  { %321 = vmatpush.msrb.mxu0 %v289_v16  ;;  %366 = vmatpush.msra.mxu3 %v289_v16 }
 0x1fe   :  { %322 = vmatpush.msrb.mxu0 %v288_v17  ;;  %367 = vmatpush.msra.mxu3 %v288_v17 }
 0x1ff   :  { %364 = vmatmul.msk.f32.vlgmr.msrb.gmra.mxu0 %vm300_vm15, %v159_v5  ;;  %365 = vmatmul.msk.f32.vlgmr.msra.gmra.mxu3 %vm300_vm15, %v160_v18 }
 0x27c   :  { %v324_v2 = vpop.f32.mrf.mxu0 }
 0x27d   :  { %v325_v20 = vadd.f32 %v324_v2, %v293_v60 }
 0x27f   :  { %v332_v21 = vadd.f32 %v330_v19, %v325_v20 }
 0x281   :  { %334 = vst.msk [vmem:[%s565_s12] sm:$0xff] %vm128_vm6, %v332_v21 }
 0x282   :  { %v327_v23 = vpop.f32.mrf.mxu3 }
 0x283   :  { %v328_v25 = vadd.f32 %v327_v23, %v298_v22 }
 0x285   :  { %v333_v26 = vadd.f32 %v331_v24, %v328_v25 }
 0x287   :  { %335 = vst.msk [vmem:[%s565_s12 + $0x8] sm:$0xff] %vm128_vm6, %v333_v26 }
 0x288   :  { %403 = dma.done.wait [#allocation3], 128  }
 0x289   :  { %404 = vsyncadd [#allocation3], 4294967168 }
 0x28a   :  { %355 = vsyncpa [#allocation3], 1 }

</bundles_post_ra>
